<compile_context>
chip_gen: v7x
topology: tpu7x:2x2x1
jax: 0.10.0
libtpu: 0.0.40
codegen_flags: <defaults>
</compile_context>

<pallas_src>
import functools

import jax
import jax.numpy as jnp
from jax.experimental import pallas as pl
from jax.experimental.pallas import tpu as pltpu


def _round_up(x, m):
    return ((x + m - 1) // m) * m


def _choose_tile(n128, cap):
    """Largest multiple of 128 <= cap that divides n128 (to avoid padding)."""
    limit = max(128, min(n128, cap))
    best = 128
    for t in range(128, limit + 1, 128):
        if n128 % t == 0:
            best = t
    if best * 8 < limit:
        # No reasonable divisor: take a big tile and pad up to a multiple of it.
        return limit
    return best


def _persample_sqsum_kernel(x_ref, y_ref, mse_ref, acc_ref, *, inv_n):
    """Accumulate sum((x-y)^2) per sample over the streamed lane axis."""
    j = pl.program_id(1)

    @pl.when(j == 0)
    def _():
        acc_ref[...] = jnp.zeros_like(acc_ref)

    # Pure streaming: sub + mul + add, full-width VALU, no per-tile XLU reduce.
    d = x_ref[...].astype(jnp.float32) - y_ref[...].astype(jnp.float32)
    acc_ref[...] += d * d

    @pl.when(j == pl.num_programs(1) - 1)
    def _():
        # One cross-lane reduce + one scale, only once per batch block.
        per_sample = jnp.sum(acc_ref[...], axis=1, keepdims=True) * inv_n
        mse_ref[...] = per_sample.astype(mse_ref.dtype)


def topk_mse_loss(output, label, topk, *, block_bytes=2 * 1024 * 1024):
    """Pallas implementation of TopkMSELoss.forward.

    output, label: (B, L, D) float arrays
    returns: (topk,) float32, sorted descending (torch.topk semantics)
    """
    B, L, D = output.shape
    if topk > B:
        raise ValueError(f"topk ({topk}) must be <= batch size ({B})")

    N = L * D
    x = output.reshape(B, N)
    y = label.reshape(B, N)

    # Batch block: 8 rows when B is a clean multiple of 8 (gives a "parallel"
    # axis for v7x megacore), otherwise the whole batch (full-dim block is
    # always legal).
    bb = 8 if (B % 8 == 0 and B > 8) else B

    # Lane-dense tile: multiple of 128, capped at ~block_bytes per input block.
    n128 = _round_up(N, 128)
    cap = max(128, (block_bytes // (bb * 4)) // 128 * 128)
    T = _choose_tile(n128, cap)
    n_pad = _round_up(N, T)
    if n_pad != N:
        # Zero padding contributes 0 to the squared-error sums.
        x = jnp.pad(x, ((0, 0), (0, n_pad - N)))
        y = jnp.pad(y, ((0, 0), (0, n_pad - N)))

    grid = (B // bb, n_pad // T)
    kernel = functools.partial(_persample_sqsum_kernel, inv_n=1.0 / float(N))

    mse = pl.pallas_call(
        kernel,
        out_shape=jax.ShapeDtypeStruct((B, 1), jnp.float32),
        grid_spec=pltpu.PrefetchScalarGridSpec(
            num_scalar_prefetch=0,
            grid=grid,
            in_specs=[
                pl.BlockSpec((bb, T), lambda i, j: (i, j)),
                pl.BlockSpec((bb, T), lambda i, j: (i, j)),
            ],
            out_specs=pl.BlockSpec((bb, 1), lambda i, j: (i, 0)),
            scratch_shapes=[pltpu.VMEM((bb, T), jnp.float32)],
        ),
        compiler_params=pltpu.CompilerParams(
            dimension_semantics=("parallel", "arbitrary"),
            vmem_limit_bytes=32 * 1024 * 1024,
        ),
    )(x, y)

    per_sample = mse[:, 0]                       # (B,)
    # Top-k of a tiny (B,) vector: done outside the kernel (sorted descending,
    # matching torch.topk).
    return jax.lax.top_k(per_sample, topk)[0]


if __name__ == "__main__":
    key = jax.random.PRNGKey(0)
    k1, k2 = jax.random.split(key)

    B, L, D = 8, 16, 32   # batch, seq_len, feature_dim (matches mean(2).mean(1))
    topk = 4

    output = jax.random.normal(k1, (B, L, D), dtype=jnp.float32)
    label = jax.random.normal(k2, (B, L, D), dtype=jnp.float32)

    got = topk_mse_loss(output, label, topk)
    got = jax.block_until_ready(got)

    # Pure-JAX reference (mirrors the PyTorch module exactly).
    per_sample_ref = jnp.mean(jnp.mean((output - label) ** 2, axis=2), axis=1)
    ref = jax.lax.top_k(per_sample_ref, topk)[0]

    assert got.shape == (topk,)
    assert jnp.allclose(got, ref, rtol=1e-5, atol=1e-6), (got, ref)
    print("KERNEL_OK")
</pallas_src>

<mosaic_0001>
module attributes {stable_mosaic.version = 11 : i64} {
  func.func @_persample_sqsum_kernel(%arg0: i32, %arg1: i32, %arg2: memref<8x512xf32, #tpu.memory_space<vmem>>, %arg3: memref<8x512xf32, #tpu.memory_space<vmem>>, %arg4: memref<8x1xf32, #tpu.memory_space<vmem>>, %arg5: memref<8x512xf32, #tpu.memory_space<vmem>>) attributes {dimension_semantics = [#tpu.dimension_semantics<parallel>, #tpu.dimension_semantics<arbitrary>], iteration_bounds = array<i64: 1, 1>, scalar_prefetch = 0 : i64, scratch_operands = 1 : i64, tpu.core_type = #tpu.core_type<tc>, window_params = [{transform_indices = @transform_0, window_bounds = array<i64: 8, 512>}, {transform_indices = @transform_1, window_bounds = array<i64: 8, 512>}, {transform_indices = @transform_2, window_bounds = array<i64: 8, 1>}]} {
    %c0_i32 = arith.constant 0 : i32
    %0 = arith.cmpi eq, %arg1, %c0_i32 : i32
    %1 = arith.extui %0 : i1 to i32
    %c0_i32_0 = arith.constant 0 : i32
    %2 = arith.cmpi ne, %1, %c0_i32_0 : i32
    scf.if %2 {
      %cst = arith.constant 0.000000e+00 : f32
      %13 = vector.broadcast %cst : f32 to vector<8x512xf32>
      %c0_10 = arith.constant 0 : index
      %c0_11 = arith.constant 0 : index
      %14 = vector.load %arg5[%c0_10, %c0_11] : memref<8x512xf32, #tpu.memory_space<vmem>>, vector<8x512xf32>
      tpu.vector_store %arg5[%c0_10, %c0_11], %13 {strides = array<i32>} : memref<8x512xf32, #tpu.memory_space<vmem>>, vector<8x512xf32>,
    } else {
    }
    %c0 = arith.constant 0 : index
    %c0_1 = arith.constant 0 : index
    %3 = vector.load %arg2[%c0, %c0_1] : memref<8x512xf32, #tpu.memory_space<vmem>>, vector<8x512xf32>
    %c0_2 = arith.constant 0 : index
    %c0_3 = arith.constant 0 : index
    %4 = vector.load %arg3[%c0_2, %c0_3] : memref<8x512xf32, #tpu.memory_space<vmem>>, vector<8x512xf32>
    %5 = arith.subf %3, %4 : vector<8x512xf32>
    %c0_4 = arith.constant 0 : index
    %c0_5 = arith.constant 0 : index
    %6 = vector.load %arg5[%c0_4, %c0_5] : memref<8x512xf32, #tpu.memory_space<vmem>>, vector<8x512xf32>
    %7 = arith.mulf %5, %5 : vector<8x512xf32>
    %8 = arith.addf %6, %7 : vector<8x512xf32>
    %c0_6 = arith.constant 0 : index
    %c0_7 = arith.constant 0 : index
    %9 = vector.load %arg5[%c0_6, %c0_7] : memref<8x512xf32, #tpu.memory_space<vmem>>, vector<8x512xf32>
    tpu.vector_store %arg5[%c0_6, %c0_7], %8 {strides = array<i32>} : memref<8x512xf32, #tpu.memory_space<vmem>>, vector<8x512xf32>,
    %c0_i32_8 = arith.constant 0 : i32
    %10 = arith.cmpi eq, %arg1, %c0_i32_8 : i32
    %11 = arith.extui %10 : i1 to i32
    %c0_i32_9 = arith.constant 0 : i32
    %12 = arith.cmpi ne, %11, %c0_i32_9 : i32
    scf.if %12 {
      %c0_10 = arith.constant 0 : index
      %c0_11 = arith.constant 0 : index
      %13 = vector.load %arg5[%c0_10, %c0_11] : memref<8x512xf32, #tpu.memory_space<vmem>>, vector<8x512xf32>
      %cst = arith.constant dense<0.000000e+00> : vector<8xf32>
      %14 = vector.multi_reduction <add>, %13, %cst [1] : vector<8x512xf32> to vector<8xf32>
      %15 = vector.shape_cast %14 : vector<8xf32> to vector<8x1xf32>
      %cst_12 = arith.constant 0.001953125 : f32
      %16 = vector.broadcast %cst_12 : f32 to vector<8x1xf32>
      %17 = arith.mulf %15, %16 : vector<8x1xf32>
      %c0_13 = arith.constant 0 : index
      %c0_14 = arith.constant 0 : index
      %18 = vector.load %arg4[%c0_13, %c0_14] : memref<8x1xf32, #tpu.memory_space<vmem>>, vector<8x1xf32>
      tpu.vector_store %arg4[%c0_13, %c0_14], %17 {strides = array<i32>} : memref<8x1xf32, #tpu.memory_space<vmem>>, vector<8x1xf32>,
    } else {
    }
    return
  }
  func.func @transform_0(%arg0: i32, %arg1: i32) -> (i32, i32) {
    %c0_i32 = arith.constant 0 : i32
    return %arg0, %arg1 : i32, i32
  }
  func.func @transform_1(%arg0: i32, %arg1: i32) -> (i32, i32) {
    %c0_i32 = arith.constant 0 : i32
    return %arg0, %arg1 : i32, i32
  }
  func.func @transform_2(%arg0: i32, %arg1: i32) -> (i32, i32) {
    %c0_i32 = arith.constant 0 : i32
    %c0_i32_0 = arith.constant 0 : i32
    return %arg0, %c0_i32 : i32, i32
  }
}

</mosaic_0001>

<bundles_post_ra>
// kernel: tpu_custom_call.1
= control target key start
LH: loop header
LB: loop body
LE: loop exit
PB: predicated region body
PF: predicated region fallthrough
CT: control target
= control target key end

     0   :  { %7 = vsyncpa [#allocation4], 0  ;;  %s186_s0 = inlined_call_operand.hbm [shape: f32[8,512], index: 0, kind: input, shape index: {}]   ;;  %s187_s1 = inlined_call_operand.hbm [shape: f32[8,512], index: 1, kind: input, shape index: {}]   ;;  %s188_s2 = inlined_call_operand.vmem [shape: f32[8,1], index: 2, kind: output, shape index: {}]  }
   0x1   :  { %8 = vsyncpa [#allocation6], 0  ;;  %s142_s9 = smov [#allocation3]   ;;  %s143_s11 = smov [#allocation5]  }
   0x2   :  { %s15_s10 = sshll.u32 %s142_s9, 4  ;;  %s25_s12 = sshll.u32 %s143_s11, 4  ;;  %s16_s10 = int_to_ptr.vmem [resolvable:$true] %s15_s10  ;;  %s26_s12 = int_to_ptr.vmem [resolvable:$true] %s25_s12 }
   0x3   :  { %s94_s15 = scalar_lea.hbm %s186_s0, 512 }
   0x4   :  { %p95_p0 = scmp.ne.s32.totalorder %s186_s0, %s94_s15  ;;  %p98_p1 = scmp.lt.u32.totalorder %s94_s15, %s186_s0 }
   0x6   :  { %p100_p2 = pnand %p98_p1, %p95_p0 }
   0x8   :  { %103 = shalt.err (!%p100_p2)
}
   0x9   :  { %s104_s20 = scalar_lea.vmem %s16_s10, 512  ;;  %p109_p4 = scmp.lt.s32.totalorder %s16_s10, %s16_s10 }
   0xa   :  { %p105_p3 = scmp.ne.s32.totalorder %s16_s10, %s104_s20  ;;  %p110_p5 = scmp.lt.s32.totalorder %s104_s20, %s104_s20 }
   0xc   :  { %p111_p6 = por %p110_p5, %p109_p4 }
   0xe   :  { %p112_p7 = pnand %p111_p6, %p105_p3 }
  0x10   :  { %115 = shalt.err (!%p112_p7)
}
  0x11   :  { %18 = dma.hbm_to_vmem [thread:$0]  %s186_s0, 512, %s16_s10, [#allocation4]  }
  0x12   :  { %s116_s25 = scalar_lea.hbm %s187_s1, 512 }
  0x13   :  { %p117_p8 = scmp.ne.s32.totalorder %s187_s1, %s116_s25  ;;  %p120_p9 = scmp.lt.u32.totalorder %s116_s25, %s187_s1 }
  0x15   :  { %p122_p10 = pnand %p120_p9, %p117_p8 }
  0x17   :  { %125 = shalt.err (!%p122_p10)
}
  0x18   :  { %s126_s30 = scalar_lea.vmem %s26_s12, 512  ;;  %p131_p12 = scmp.lt.s32.totalorder %s26_s12, %s26_s12 }
  0x19   :  { %p127_p11 = scmp.ne.s32.totalorder %s26_s12, %s126_s30  ;;  %p132_p13 = scmp.lt.s32.totalorder %s126_s30, %s126_s30 }
  0x1b   :  { %p133_p0 = por %p132_p13, %p131_p12 }
  0x1d   :  { %p134_p1 = pnand %p133_p0, %p127_p11 }
  0x1f   :  { %137 = shalt.err (!%p134_p1)
}
  0x20   :  { %28 = dma.hbm_to_vmem [thread:$0]  %s187_s1, 512, %s26_s12, [#allocation6]  }
  0x21   :  { %138 = dma.done.wait [#allocation4], 512  }
  0x22   :  { %139 = vsyncadd [#allocation4], 4294966784 }
  0x23   :  { %140 = dma.done.wait [#allocation6], 512  }
  0x24   :  { %141 = vsyncadd [#allocation6], 4294966784  ;;  %v43_v0 = vld [vmem:[#allocation3] sm:$0xff]  ;;  %v44_v1 = vld [vmem:[#allocation3 + $0x8] sm:$0xff]  ;;  %vm84_vm0 = vcmask 7168  }
  0x25   :  { %v45_v2 = vld [vmem:[#allocation3 + $0x10] sm:$0xff]  ;;  %v46_v3 = vld [vmem:[#allocation3 + $0x18] sm:$0xff]  ;;  %v47_v4 = vld [vmem:[#allocation5] sm:$0xff] }
  0x26   :  { %v48_v5 = vld [vmem:[#allocation5 + $0x8] sm:$0xff]  ;;  %v49_v6 = vld [vmem:[#allocation5 + $0x10] sm:$0xff]  ;;  %v50_v7 = vld [vmem:[#allocation5 + $0x18] sm:$0xff]  ;;  %v51_v8 = vsub.f32 %v43_v0, %v47_v4 }
  0x27   :  { %v52_v9 = vsub.f32 %v44_v1, %v48_v5  ;;  %v53_v10 = vsub.f32 %v45_v2, %v49_v6  ;;  %v54_v11 = vsub.f32 %v46_v3, %v50_v7 }
  0x28   :  { %v59_v12 = vmul.f32 %v51_v8, %v51_v8 }
  0x29   :  { %v60_v13 = vmul.f32 %v52_v9, %v52_v9  ;;  %v61_v14 = vmul.f32 %v53_v10, %v53_v10  ;;  %v62_v15 = vmul.f32 %v54_v11, %v54_v11 }
  0x2b   :  { %v78_v16 = vadd.f32 %v60_v13, %v59_v12 }
  0x2d   :  { %v79_v17 = vadd.f32 %v78_v16, %v61_v14 }
  0x2f   :  { %v80_v18 = vadd.f32 %v79_v17, %v62_v15 }
  0x31   :  { %81 = vadd.xlane.f32.xlu0 %v80_v18 }
  0xbe   :  { %v82_v19 = vpop.xlane.xlu0 %81 }
  0xbf   :  { %v83_v20 = vmul.f32 0.001953125, %v82_v19 }
  0xc1   :  { %85 = vst.msk [vmem:[%s188_s2] sm:$0xff] %vm84_vm0, %v83_v20 }
  0xc2   :  { %90 = vsyncpa [#allocation4], 1 }
  0xc3   :  { %91 = vsyncpa [#allocation6], 1 }

</bundles_post_ra>
